<compile_context>
chip_gen: v7x
topology: tpu7x:2x2x1
jax: 0.10.0
libtpu: 0.0.40
codegen_flags: <defaults>
</compile_context>

<pallas_src>
import functools
import math

import jax
import jax.numpy as jnp
from jax.experimental import pallas as pl
from jax.experimental.pallas import tpu as pltpu

F32 = jnp.float32
BF16 = jnp.bfloat16
_EPS_BN = 1e-5
_EPS_GN = 1e-5


def _round_up(x, m):
    return ((x + m - 1) // m) * m


@functools.lru_cache(maxsize=None)
def _vmem_limit_bytes():
    """~64 MiB on v5e/v6e (128 MiB VMEM), ~48 MiB on v7x (64 MiB VMEM)."""
    cap = 128 * 1024 * 1024
    try:
        cap = int(pltpu.get_tpu_info().vmem_capacity_bytes)
    except Exception:
        pass
    return int(min(64 * 1024 * 1024, cap * 3 // 4))


# ---------------------------- Pallas kernels ----------------------------

def _fused_matmul_kernel(a_ref, b_ref, s_ref, o_ref, acc_ref, *, relu):
    """acc += A@B over K grid axis; on last k: out = acc + shift (+ReLU)."""
    k = pl.program_id(1)

    @pl.when(k == 0)
    def _():
        acc_ref[...] = jnp.zeros_like(acc_ref)

    a = a_ref[...].astype(BF16)          # no-op if already bf16
    acc_ref[...] += jnp.dot(a, b_ref[...], preferred_element_type=jnp.float32)

    @pl.when(k == pl.num_programs(1) - 1)
    def _():
        y = acc_ref[...] + s_ref[...]
        if relu:
            y = jnp.maximum(y, 0.0)
        o_ref[...] = y


def _fused_matmul_res_kernel(a_ref, b_ref, s_ref, r_ref, o_ref, acc_ref, *, relu):
    """Same as above, plus residual add in the epilogue."""
    k = pl.program_id(1)

    @pl.when(k == 0)
    def _():
        acc_ref[...] = jnp.zeros_like(acc_ref)

    a = a_ref[...].astype(BF16)
    acc_ref[...] += jnp.dot(a, b_ref[...], preferred_element_type=jnp.float32)

    @pl.when(k == pl.num_programs(1) - 1)
    def _():
        y = acc_ref[...] + s_ref[...] + r_ref[...]
        if relu:
            y = jnp.maximum(y, 0.0)
        o_ref[...] = y


def _choose_k_tile(K):
    """Pick a K tile that divides K exactly (multiple of 128) and is ~512."""
    if K % 128 == 0 and K > 768:
        units = K // 128
        for nk in range((K + 511) // 512, units + 1):
            if units % nk == 0:
                return K // nk
    return K


def pallas_matmul_fused(a, b, shift=None, residual=None, relu=False):
    """(M,K) @ (K,N) [+ shift(N)] [+ residual(M,N)] [ReLU].

    bf16 MXU operands, f32 accumulation/epilogue. N padded to a multiple of
    128 for lane-dense stores; M padded to the tile; K tiled with a VMEM
    accumulator (grid = (M tiles, K tiles), ("parallel", "arbitrary")).
    """
    M, K = a.shape
    K2, N = b.shape
    assert K == K2

    # lane-dense output: pad N to multiple of 128
    Np = _round_up(N, 128)
    if Np != N:
        b = jnp.pad(b, ((0, 0), (0, Np - N)))
        if shift is not None:
            shift = jnp.pad(shift, ((0, Np - N),))
        if residual is not None:
            residual = jnp.pad(residual, ((0, 0), (0, Np - N)))

    # M padding / tile
    Mp = _round_up(M, 8)
    tm = min(256, Mp)
    Mp = _round_up(Mp, tm)
    if Mp != M:
        a = jnp.pad(a, ((0, Mp - M), (0, 0)))
        if residual is not None:
            residual = jnp.pad(residual, ((0, Mp - M), (0, 0)))

    # K tiling (tk divides K exactly, or tk == K)
    tk = _choose_k_tile(K)
    nk = K // tk

    b = b.astype(BF16)
    if shift is None:
        shift = jnp.zeros((Np,), F32)
    shift2 = shift.reshape(1, Np).astype(F32)

    in_specs = [
        pl.BlockSpec((tm, tk), lambda i, k: (i, k)),
        pl.BlockSpec((tk, Np), lambda i, k: (k, 0)),
        pl.BlockSpec((1, Np), lambda i, k: (0, 0)),
    ]
    args = [a, b, shift2]
    if residual is not None:
        in_specs.append(pl.BlockSpec((tm, Np), lambda i, k: (i, 0)))
        args.append(residual.astype(F32))
        kern = functools.partial(_fused_matmul_res_kernel, relu=relu)
    else:
        kern = functools.partial(_fused_matmul_kernel, relu=relu)

    out = pl.pallas_call(
        kern,
        out_shape=jax.ShapeDtypeStruct((Mp, Np), F32),
        grid=(Mp // tm, nk),
        in_specs=in_specs,
        out_specs=pl.BlockSpec((tm, Np), lambda i, k: (i, 0)),
        scratch_shapes=[pltpu.VMEM((tm, Np), F32)],
        compiler_params=pltpu.CompilerParams(
            dimension_semantics=("parallel", "arbitrary"),
            vmem_limit_bytes=_vmem_limit_bytes()),
    )(*args)
    return out[:M, :N]


def _maxpool9_kernel(*refs):
    o_ref = refs[9]
    m = refs[0][...]
    for idx in range(1, 9):
        m = jnp.maximum(m, refs[idx][...])
    o_ref[...] = m


def maxpool_3x3_s2_p1(x):
    """3x3 / stride 2 / pad 1 max pool; 9 window slices reduced in one kernel."""
    B, H, W, C = x.shape
    Ho = (H + 2 - 3) // 2 + 1
    Wo = (W + 2 - 3) // 2 + 1
    xp = jnp.pad(x, ((0, 0), (1, 1), (1, 1), (0, 0)), constant_values=-jnp.inf)
    wins = [xp[:, i:i + 2 * (Ho - 1) + 1:2, j:j + 2 * (Wo - 1) + 1:2, :]
            .reshape(B * Ho * Wo, C).astype(F32)
            for i in range(3) for j in range(3)]
    M = B * Ho * Wo
    Mp = _round_up(M, 8)
    tm = min(512, Mp)
    Mp = _round_up(Mp, tm)
    if Mp != M:
        wins = [jnp.pad(w_, ((0, Mp - M), (0, 0)), constant_values=-jnp.inf)
                for w_ in wins]
    out = pl.pallas_call(
        _maxpool9_kernel,
        out_shape=jax.ShapeDtypeStruct((Mp, C), F32),
        grid=(Mp // tm,),
        in_specs=[pl.BlockSpec((tm, C), lambda i: (i, 0))] * 9,
        out_specs=pl.BlockSpec((tm, C), lambda i: (i, 0)),
        compiler_params=pltpu.CompilerParams(
            dimension_semantics=("parallel",)),
    )(*wins)
    return out[:M].reshape(B, Ho, Wo, C)


def _mean_kernel(x_ref, o_ref):
    o_ref[...] = jnp.mean(x_ref[...], axis=1)


def pallas_spatial_mean(x):
    """x: (B, HW, C) -> (B, C), mean over HW (global average pool)."""
    B, HW, C = x.shape
    return pl.pallas_call(
        _mean_kernel,
        out_shape=jax.ShapeDtypeStruct((B, C), F32),
        grid=(1,),
        in_specs=[pl.BlockSpec((B, HW, C), lambda i: (0, 0, 0))],
        out_specs=pl.BlockSpec((B, C), lambda i: (0, 0)),
    )(x.astype(F32))


def _groupnorm_add_kernel(x_ref, g_ref, b_ref, r_ref, o_ref, *, eps):
    x = x_ref[...]
    mean = jnp.mean(x, axis=-1, keepdims=True)
    var = jnp.mean((x - mean) ** 2, axis=-1, keepdims=True)
    xn = (x - mean) * jax.lax.rsqrt(var + eps)
    o_ref[...] = xn * g_ref[...] + b_ref[...] + r_ref[...]


def pallas_groupnorm_add(x, gamma, beta, residual, eps=_EPS_GN):
    """x, residual: (B, G, D); gamma, beta: (G, D). GroupNorm + residual add."""
    B, G, D = x.shape
    kern = functools.partial(_groupnorm_add_kernel, eps=eps)
    return pl.pallas_call(
        kern,
        out_shape=jax.ShapeDtypeStruct((B, G, D), F32),
        grid=(1,),
        in_specs=[
            pl.BlockSpec((B, G, D), lambda i: (0, 0, 0)),
            pl.BlockSpec((G, D), lambda i: (0, 0)),
            pl.BlockSpec((G, D), lambda i: (0, 0)),
            pl.BlockSpec((B, G, D), lambda i: (0, 0, 0)),
        ],
        out_specs=pl.BlockSpec((B, G, D), lambda i: (0, 0, 0)),
    )(x.astype(F32), gamma.astype(F32), beta.astype(F32), residual.astype(F32))


def _cgnlx_kernel(t_ref, p_ref, g_ref, o_ref, *, order, gamma):
    # Gaussian-RBF kernel via Taylor expansion (SpatialCGNLx.kernel), per row
    # (row = one (batch, group) with L = c*h*w elements). f32 VPU/EUP math.
    t = t_ref[...]
    p = p_ref[...]
    g = g_ref[...]
    beta = math.exp(-2.0 * gamma)
    out = jnp.zeros_like(t)
    for k in range(order + 1):
        alpha = math.sqrt(((2.0 * gamma) ** k) / math.factorial(k) * beta)
        if k == 0:
            t_k = alpha * jnp.ones_like(t)
            p_k = alpha * jnp.ones_like(p)
        else:
            t_k = alpha * (t ** k)
            p_k = alpha * (p ** k)
        att_k = jnp.sum(p_k * g, axis=-1, keepdims=True)   # bmm(p_taylor, g)
        out = out + att_k * t_k                             # bmm(att, t_taylor)
    o_ref[...] = out


def pallas_cgnlx(t, p, g, order=3, gamma=1e-4):
    BG, L = t.shape
    kern = functools.partial(_cgnlx_kernel, order=order, gamma=gamma)
    return pl.pallas_call(
        kern,
        out_shape=jax.ShapeDtypeStruct((BG, L), F32),
        grid=(1,),
        in_specs=[pl.BlockSpec((BG, L), lambda i: (0, 0))] * 3,
        out_specs=pl.BlockSpec((BG, L), lambda i: (0, 0)),
    )(t.astype(F32), p.astype(F32), g.astype(F32))


# ------------------------------ layers (glue + kernels) ------------------------------

def conv2d_bn(x, w, gamma=None, beta=None, stride=1, pad=0, relu=False, residual=None):
    """Conv2d (x: NHWC, w: PyTorch (Cout,Cin,kh,kw)) with eval-mode BatchNorm
    folded into the weights and shift/residual/ReLU fused into the matmul
    epilogue. Returns NHWC f32."""
    B, H, W, Cin = x.shape
    Cout, _, kh, kw = w.shape
    Ho = (H + 2 * pad - kh) // stride + 1
    Wo = (W + 2 * pad - kw) // stride + 1
    if kh == 1 and kw == 1 and pad == 0:
        xs = x if stride == 1 else x[:, ::stride, ::stride, :]
        patches = xs.reshape(B * Ho * Wo, Cin)               # f32, cast in-kernel
        w2 = jnp.transpose(w[:, :, 0, 0], (1, 0)).astype(F32)   # (Cin, Cout)
    else:
        # im2col in bf16 (halves the materialized patches bytes)
        xp = jnp.pad(x.astype(BF16), ((0, 0), (pad, pad), (pad, pad), (0, 0)))
        cols = [xp[:, i:i + stride * (Ho - 1) + 1:stride,
                   j:j + stride * (Wo - 1) + 1:stride, :]
                for i in range(kh) for j in range(kw)]
        patches = jnp.stack(cols, axis=3).reshape(B * Ho * Wo, kh * kw * Cin)
        w2 = jnp.transpose(w, (2, 3, 1, 0)).reshape(kh * kw * Cin, Cout).astype(F32)
    if gamma is not None:
        # eval-mode BN (running_mean=0, running_var=1): fold gamma/sqrt(1+eps)
        w2 = w2 * (gamma / jnp.sqrt(1.0 + _EPS_BN))[None, :]
        shift = beta
    else:
        shift = beta
    res2 = residual.reshape(-1, Cout).astype(F32) if residual is not None else None
    out = pallas_matmul_fused(patches, w2, shift=shift, residual=res2, relu=relu)
    return out.reshape(B, Ho, Wo, Cout)


def basic_block_forward(x, p):
    """torchvision BasicBlock: relu(bn2(conv2(relu(bn1(conv1(x))))) + downsample(x))."""
    stride = p['stride']
    out = conv2d_bn(x, p['w1'], p['bn1_g'], p['bn1_b'], stride=stride, pad=1, relu=True)
    if p['downsample'] is not None:
        d = p['downsample']
        res = conv2d_bn(x, d['w'], d['bn_g'], d['bn_b'], stride=stride, pad=0, relu=False)
    else:
        res = x
    out = conv2d_bn(out, p['w2'], p['bn2_g'], p['bn2_b'], stride=1, pad=1,
                    relu=True, residual=res)
    return out


def cgnlx_forward(x, p):
    """SpatialCGNLx (groups=8, order=3, use_scale=False)."""
    B, H, W, C = x.shape                 # C = inplanes
    groups, order = p['groups'], p['order']
    residual = x
    t = conv2d_bn(x, p['wt'])
    ph = conv2d_bn(x, p['wp'])
    g = conv2d_bn(x, p['wg'])
    Cp = t.shape[-1]                     # planes
    cg = Cp // groups
    L = cg * H * W

    def to_groups(a):                    # NHWC -> (B*groups, c*h*w) in NCHW flatten order
        return jnp.transpose(a, (0, 3, 1, 2)).reshape(B * groups, L)

    xk = pallas_cgnlx(to_groups(t), to_groups(ph), to_groups(g), order=order, gamma=1e-4)
    xk = jnp.transpose(xk.reshape(B, Cp, H, W), (0, 2, 3, 1))     # NHWC (B,H,W,Cp)

    # grouped 1x1 conv z -> block-diagonal (Cp, C) weight, one fused matmul.
    # (zeros waste 7/8 of the MXU FLOPs, tolerable at this size.)
    wz = p['wz']                                          # (C, cg, 1, 1)
    cout_g = C // groups
    Wbd = jnp.zeros((Cp, C), F32)
    for gi in range(groups):
        blk = wz[gi * cout_g:(gi + 1) * cout_g, :, 0, 0]  # (cout_g, cg)
        Wbd = Wbd.at[gi * cg:(gi + 1) * cg, gi * cout_g:(gi + 1) * cout_g].set(blk.T)
    z = pallas_matmul_fused(xk.reshape(-1, Cp), Wbd).reshape(B, H, W, C)

    # GroupNorm(groups, C) + residual (gamma/beta broadcast is only ~KBs here)
    Dg = cout_g * H * W
    z_g = jnp.transpose(z, (0, 3, 1, 2)).reshape(B, groups, Dg)
    r_g = jnp.transpose(residual, (0, 3, 1, 2)).reshape(B, groups, Dg)
    gamma_g = jnp.broadcast_to(p['gn_g'].reshape(groups, cout_g, 1),
                               (groups, cout_g, H * W)).reshape(groups, Dg)
    beta_g = jnp.broadcast_to(p['gn_b'].reshape(groups, cout_g, 1),
                              (groups, cout_g, H * W)).reshape(groups, Dg)
    out_g = pallas_groupnorm_add(z_g, gamma_g, beta_g, r_g)
    return jnp.transpose(out_g.reshape(B, C, H, W), (0, 2, 3, 1))


# ------------------------------ parameters ------------------------------

def kaiming_conv(key, cout, cin, kh, kw):
    std = math.sqrt(2.0 / (kh * kw * cout))               # kaiming_normal_, fan_out, relu
    return std * jax.random.normal(key, (cout, cin, kh, kw), F32)


def normal_conv(key, cout, cin, kh, kw, std=0.01):
    return std * jax.random.normal(key, (cout, cin, kh, kw), F32)


def init_basic_block(key, inplanes, planes, stride, downsample):
    k = jax.random.split(key, 3)
    p = {
        'stride': stride,
        'w1': kaiming_conv(k[0], planes, inplanes, 3, 3),
        'bn1_g': jnp.ones((planes,), F32), 'bn1_b': jnp.zeros((planes,), F32),
        'w2': kaiming_conv(k[1], planes, planes, 3, 3),
        'bn2_g': jnp.ones((planes,), F32), 'bn2_b': jnp.zeros((planes,), F32),
        'downsample': None,
    }
    if downsample:
        p['downsample'] = {
            'w': kaiming_conv(k[2], planes, inplanes, 1, 1),
            'bn_g': jnp.ones((planes,), F32), 'bn_b': jnp.zeros((planes,), F32),
        }
    return p


def init_cgnlx(key, inplanes, planes, groups):
    # ResNet special init for nl_nums==1 / layer3[-2]: convs ~ N(0, 0.01), GroupNorm -> 0
    k = jax.random.split(key, 4)
    return {
        'groups': groups, 'order': 3,
        'wt': normal_conv(k[0], planes, inplanes, 1, 1),
        'wp': normal_conv(k[1], planes, inplanes, 1, 1),
        'wg': normal_conv(k[2], planes, inplanes, 1, 1),
        'wz': normal_conv(k[3], inplanes, planes // groups, 1, 1),
        'gn_g': jnp.zeros((inplanes,), F32),
        'gn_b': jnp.zeros((inplanes,), F32),
    }


def init_resnet_params(key, layers=(1, 1, 6, 1), num_classes=1000,
                       nl_type='cgnlx', nl_nums=1):
    keys = iter(jax.random.split(key, 64))
    params = {
        'conv1': kaiming_conv(next(keys), 64, 3, 7, 7),
        'bn1_g': jnp.ones((64,), F32),
        'bn1_b': jnp.zeros((64,), F32),
    }
    inplanes = [64]

    def make_layer(planes, blocks, stride=1, with_nl=False):
        mods = []
        down = (stride != 1) or (inplanes[0] != planes)
        mods.append(('block', init_basic_block(next(keys), inplanes[0], planes, stride, down)))
        inplanes[0] = planes
        for i in range(1, blocks):
            if with_nl and ((i == 5 and blocks == 6) or (i == 22 and blocks == 23)
                            or (i == 35 and blocks == 36)):
                mods.append(('cgnlx', init_cgnlx(next(keys), inplanes[0], inplanes[0] // 2, groups=8)))
            mods.append(('block', init_basic_block(next(keys), inplanes[0], planes, 1, False)))
        return mods

    params['layer1'] = make_layer(64, layers[0])
    params['layer2'] = make_layer(128, layers[1], stride=2)
    params['layer3'] = make_layer(256, layers[2], stride=2,
                                  with_nl=(nl_type == 'cgnlx' and bool(nl_nums)))
    params['layer4'] = make_layer(512, layers[3], stride=2)
    k1, k2 = jax.random.split(next(keys))
    bound = 1.0 / math.sqrt(512)
    params['fc_w'] = jax.random.uniform(k1, (num_classes, 512), F32, -bound, bound)
    params['fc_b'] = jax.random.uniform(k2, (num_classes,), F32, -bound, bound)
    return params


# ------------------------------ forward ------------------------------

def resnet_forward(x_nchw, params, pool_size):
    x = jnp.transpose(x_nchw, (0, 2, 3, 1)).astype(F32)   # NCHW -> NHWC
    x = conv2d_bn(x, params['conv1'], params['bn1_g'], params['bn1_b'],
                  stride=2, pad=3, relu=True)
    x = maxpool_3x3_s2_p1(x)
    for lname in ('layer1', 'layer2', 'layer3', 'layer4'):
        for kind, p in params[lname]:
            x = basic_block_forward(x, p) if kind == 'block' else cgnlx_forward(x, p)
    B, H, W, C = x.shape
    assert H == pool_size and W == pool_size               # avgpool(pool_size, stride=1) -> 1x1
    feat = pallas_spatial_mean(x.reshape(B, H * W, C))      # (B, C)
    # dropout(0.5): identity in eval mode
    logits = pallas_matmul_fused(feat, jnp.transpose(params['fc_w'], (1, 0)),
                                 shift=params['fc_b'], relu=False)   # bias fused, N padded 1000->1024
    return logits


if __name__ == "__main__":
    key = jax.random.PRNGKey(0)
    kx, kp = jax.random.split(key)
    x = jax.random.normal(kx, (2, 3, 64, 64), F32)           # NCHW input, like PyTorch
    params = init_resnet_params(kp, layers=(1, 1, 6, 1), num_classes=1000,
                                nl_type='cgnlx', nl_nums=1)
    out = resnet_forward(x, params, pool_size=2)
    out = jax.block_until_ready(out)
    assert out.shape == (2, 1000)
    assert bool(jnp.all(jnp.isfinite(out)))
    print("KERNEL_OK")
</pallas_src>

<mosaic_0001>
module attributes {stable_mosaic.version = 11 : i64} {
  func.func @_fused_matmul_kernel(%arg0: i32, %arg1: i32, %arg2: memref<256x147xbf16, #tpu.memory_space<vmem>>, %arg3: memref<147x128xbf16, #tpu.memory_space<vmem>>, %arg4: memref<1x128xf32, #tpu.memory_space<vmem>>, %arg5: memref<256x128xf32, #tpu.memory_space<vmem>>, %arg6: memref<256x128xf32, #tpu.memory_space<vmem>>) attributes {dimension_semantics = [#tpu.dimension_semantics<parallel>, #tpu.dimension_semantics<arbitrary>], iteration_bounds = array<i64: 8, 1>, scalar_prefetch = 0 : i64, scratch_operands = 1 : i64, tpu.core_type = #tpu.core_type<tc>, window_params = [{transform_indices = @transform_0, window_bounds = array<i64: 256, 147>}, {transform_indices = @transform_1, window_bounds = array<i64: 147, 128>}, {pipeline_mode = #tpu.pipeline_mode<synchronous>, transform_indices = @transform_2, window_bounds = array<i64: 1, 128>}, {transform_indices = @transform_3, window_bounds = array<i64: 256, 128>}]} {
    %c0_i32 = arith.constant 0 : i32
    %0 = arith.cmpi eq, %arg1, %c0_i32 : i32
    %1 = arith.extui %0 : i1 to i32
    %c0_i32_0 = arith.constant 0 : i32
    %2 = arith.cmpi ne, %1, %c0_i32_0 : i32
    scf.if %2 {
      %cst_10 = arith.constant 0.000000e+00 : f32
      %12 = vector.broadcast %cst_10 : f32 to vector<256x128xf32>
      %c0_11 = arith.constant 0 : index
      %c0_12 = arith.constant 0 : index
      %13 = vector.load %arg6[%c0_11, %c0_12] : memref<256x128xf32, #tpu.memory_space<vmem>>, vector<256x128xf32>
      tpu.vector_store %arg6[%c0_11, %c0_12], %12 {strides = array<i32>} : memref<256x128xf32, #tpu.memory_space<vmem>>, vector<256x128xf32>,
    } else {
    }
    %c0 = arith.constant 0 : index
    %c0_1 = arith.constant 0 : index
    %3 = vector.load %arg2[%c0, %c0_1] : memref<256x147xbf16, #tpu.memory_space<vmem>>, vector<256x147xbf16>
    %c0_2 = arith.constant 0 : index
    %c0_3 = arith.constant 0 : index
    %4 = vector.load %arg6[%c0_2, %c0_3] : memref<256x128xf32, #tpu.memory_space<vmem>>, vector<256x128xf32>
    %c0_4 = arith.constant 0 : index
    %c0_5 = arith.constant 0 : index
    %5 = vector.load %arg3[%c0_4, %c0_5] : memref<147x128xbf16, #tpu.memory_space<vmem>>, vector<147x128xbf16>
    %cst = arith.constant dense<0.000000e+00> : vector<256x128xf32>
    %6 = tpu.matmul %3, %5, %cst {dimension_numbers = #tpu.dot_dimension_numbers<[1], [0], [0], [1], [0, 0, 1, 1], [], []>} : vector<256x147xbf16>, vector<147x128xbf16>, vector<256x128xf32> -> vector<256x128xf32>
    %7 = arith.addf %4, %6 : vector<256x128xf32>
    %c0_6 = arith.constant 0 : index
    %c0_7 = arith.constant 0 : index
    %8 = vector.load %arg6[%c0_6, %c0_7] : memref<256x128xf32, #tpu.memory_space<vmem>>, vector<256x128xf32>
    tpu.vector_store %arg6[%c0_6, %c0_7], %7 {strides = array<i32>} : memref<256x128xf32, #tpu.memory_space<vmem>>, vector<256x128xf32>,
    %c0_i32_8 = arith.constant 0 : i32
    %9 = arith.cmpi eq, %arg1, %c0_i32_8 : i32
    %10 = arith.extui %9 : i1 to i32
    %c0_i32_9 = arith.constant 0 : i32
    %11 = arith.cmpi ne, %10, %c0_i32_9 : i32
    scf.if %11 {
      %c0_10 = arith.constant 0 : index
      %c0_11 = arith.constant 0 : index
      %12 = vector.load %arg6[%c0_10, %c0_11] : memref<256x128xf32, #tpu.memory_space<vmem>>, vector<256x128xf32>
      %c0_12 = arith.constant 0 : index
      %c0_13 = arith.constant 0 : index
      %13 = vector.load %arg4[%c0_12, %c0_13] : memref<1x128xf32, #tpu.memory_space<vmem>>, vector<1x128xf32>
      %14 = vector.broadcast %13 : vector<1x128xf32> to vector<256x128xf32>
      %15 = arith.addf %12, %14 : vector<256x128xf32>
      %cst_14 = arith.constant 0.000000e+00 : f32
      %16 = vector.broadcast %cst_14 : f32 to vector<256x128xf32>
      %17 = arith.maximumf %15, %16 : vector<256x128xf32>
      %c0_15 = arith.constant 0 : index
      %c0_16 = arith.constant 0 : index
      %18 = vector.load %arg5[%c0_15, %c0_16] : memref<256x128xf32, #tpu.memory_space<vmem>>, vector<256x128xf32>
      tpu.vector_store %arg5[%c0_15, %c0_16], %17 {strides = array<i32>} : memref<256x128xf32, #tpu.memory_space<vmem>>, vector<256x128xf32>,
    } else {
    }
    return
  }
  func.func @transform_0(%arg0: i32, %arg1: i32) -> (i32, i32) {
    %c0_i32 = arith.constant 0 : i32
    return %arg0, %arg1 : i32, i32
  }
  func.func @transform_1(%arg0: i32, %arg1: i32) -> (i32, i32) {
    %c0_i32 = arith.constant 0 : i32
    %c0_i32_0 = arith.constant 0 : i32
    return %arg1, %c0_i32 : i32, i32
  }
  func.func @transform_2(%arg0: i32, %arg1: i32) -> (i32, i32) {
    %c0_i32 = arith.constant 0 : i32
    %c0_i32_0 = arith.constant 0 : i32
    %c0_i32_1 = arith.constant 0 : i32
    return %c0_i32, %c0_i32_0 : i32, i32
  }
  func.func @transform_3(%arg0: i32, %arg1: i32) -> (i32, i32) {
    %c0_i32 = arith.constant 0 : i32
    %c0_i32_0 = arith.constant 0 : i32
    return %arg0, %c0_i32 : i32, i32
  }
}

</mosaic_0001>

<bundles_post_ra>
// kernel: tpu_custom_call.1
= control target key start
LH: loop header
LB: loop body
LE: loop exit
PB: predicated region body
PF: predicated region fallthrough
CT: control target
= control target key end

     0   :  { %8 = vsyncpa [#allocation4], 0  ;;  %s1931_s0 = inlined_call_operand.hbm [shape: bf16[2048,147], index: 0, kind: input, shape index: {}]   ;;  %s1932_s1 = inlined_call_operand.hbm [shape: bf16[147,128], index: 1, kind: input, shape index: {}]   ;;  %s1933_s2 = inlined_call_operand.hbm [shape: f32[1,128], index: 2, kind: input, shape index: {}]   ;;  %s1934_s3 = inlined_call_operand.hbm [shape: f32[2048,128], index: 3, kind: output, shape index: {}]  }
   0x1   :  { %10 = vsyncpa [#allocation4 + $0x1], 0 }
   0x2   :  { %11 = vsyncpa [#allocation7], 0 }
   0x3   :  { %12 = vsyncpa [#allocation5], 0 }
   0x4   :  { %14 = vsyncpa [#allocation5 + $0x1], 0  ;;  %s1561_s12 = smov 0   ;;  %s1563_s13 = smov 0  }
   0x5   :  { %s1565_s14 = smov 0   ;;  %s1567_s15 = smov 0  }
   0x6   :  { %s1569_s16 = smov 0   ;;  %s1571_s17 = smov 0  }
   0x7 LB: > { %s1104_s18 = sadd.s32 4294967295, %s1527_s17   ;;  %s1105_s19 = sadd.s32 4294967294, %s1527_s17   ;;  %s1527_s17 = sphi %s1571_s17, %s20_s17   ;;  %s1523_s16 = sphi %s1569_s16, %s1956_s16   ;;  %s1519_s15 = sphi %s1567_s15, %s1955_s15   ;;  %s1515_s14 = sphi %s1565_s14, %s1954_s14   ;;  %s1511_s13 = sphi %s1563_s13, %s1953_s13   ;;  %s1507_s12 = sphi %s1561_s12, %s1952_s12  }
   0x8   : > { %p54_p0 = scmp.ne.s32.totalorder %s1511_s13, %s1507_s12  ;;  %p1595_p1 = scmp.eq.s32.totalorder %s1104_s18, 0 }
   0x9   : > { %p1599_p2 = scmp.eq.s32.totalorder %s1104_s18, 7  ;;  %p131_p3 = scmp.eq.s32.totalorder %s1105_s19, 7 }
   0xa   : > { %s1939_s20 = scalar_select %p1595_p1, 1, 0 }
   0xb   : > { %s1940_s21 = scalar_select %p1599_p2, 1, 0 }
   0xc   : > { %p1605_p4 = por %p1595_p1, %p54_p0  ;;  %p1106_p5 = scmp.ge.s32.totalorder %s1527_s17, 1 }
   0xd   : > { %p1610_p6 = por %p131_p3, %p54_p0  ;;  %p138_p7 = scmp.lt.s32.totalorder %s1527_s17, 9 }
   0xe   : > { %s1941_s22 = scalar_select %p1605_p4, 1, 0 }
   0xf   : > { %s1942_s23 = scalar_select %p1610_p6, 1, 0 }
  0x10   : > { %p1615_p8 = pnand %p1106_p5, %p138_p7  ;;  %s1529_s25 = smov [#allocation6]  }
  0x11   : > { %s153_s26 = sshll.u32 %s1529_s25, 4  ;;  %s1530_s28 = smov [#allocation8]   ;;  %s154_s26 = int_to_ptr.vmem [resolvable:$true] %s153_s26 }
  0x12   : > { %s1943_s24 = scalar_select %p1615_p8, 1, 0 }
  0x13   : > { %p1218_p9 = pneg %p1615_p8  ;;  %s167_s29 = sshll.u32 %s1530_s28, 4  ;;  %s1627_s29 = int_to_ptr.vmem [resolvable:$true] %s167_s29 }
  0x14   : > { %s1355_s5 = scalar_lea.hbm %s1932_s1, 1216 }
  0x15   : > { %p1623_p10 = pnand %p1218_p9, %p1595_p1  ;;  %p1356_p11 = scmp.ne.s32.totalorder %s1932_s1, %s1355_s5 }
  0x16   : > { %p1362_p3 = scmp.lt.u32.totalorder %s1355_s5, %s1932_s1 }
  0x17   : > { %p1357_p12 = pneg %p1623_p10 }
  0x19   : > { %p1358_p13 = pnand %p1357_p12, %p1356_p11 }
  0x1b   : > { %p1359_p0 = pneg %p1358_p13 }
  0x1d   : > { %p1364_p5 = pnand %p1362_p3, %p1359_p0 }
  0x1f   : > { %1367 = shalt.err (!%p1364_p5)
}
  0x20   : > { %s1368_s10 = scalar_lea.vmem %s154_s26, 1216  ;;  %p1376_p1 = scmp.lt.s32.totalorder %s154_s26, %s154_s26 }
  0x21   : > { %p1369_p7 = scmp.ne.s32.totalorder %s154_s26, %s1368_s10  ;;  %p1377_p4 = scmp.lt.s32.totalorder %s1368_s10, %s1368_s10 }
  0x23   : > { %p1371_p9 = pnand %p1369_p7, %p1357_p12  ;;  %p1378_p8 = por %p1377_p4, %p1376_p1 }
  0x25   : > { %p1372_p6 = pneg %p1371_p9 }
  0x27   : > { %p1379_p2 = pnand %p1378_p8, %p1372_p6 }
  0x29   : > { %1382 = shalt.err (!%p1379_p2)
}
  0x2a   : > { %s1531_s11 = smov 64   ;;  %s1532_s18 = smov 4  }
  0x2b   : > { %1221 = dma.hbm_to_vmem [thread:$0]  (!%p1623_p10), %s1932_s1, 1216, %s154_s26, [#allocation7], %s1531_s11, %s1531_s11, %s1532_s18  }
  0x2c   : > { %s1383_s4 = scalar_lea.hbm %s1933_s2, 16 }
  0x2d   : > { %p1384_p11 = scmp.ne.s32.totalorder %s1933_s2, %s1383_s4  ;;  %p1390_p4 = scmp.lt.u32.totalorder %s1383_s4, %s1933_s2 }
  0x2f   : > { %p1386_p1 = pnand %p1384_p11, %p1357_p12 }
  0x31   : > { %p1387_p2 = pneg %p1386_p1 }
  0x33   : > { %p1392_p6 = pnand %p1390_p4, %p1387_p2 }
  0x35   : > { %1395 = shalt.err (!%p1392_p6)
}
  0x36   : > { %s1396_s26 = scalar_lea.vmem %s1627_s29, 16  ;;  %s1403_s9 = scalar_lea.vmem %s1627_s29, 32 }
  0x37   : > { %p1397_p8 = scmp.ne.s32.totalorder %s1627_s29, %s1396_s26  ;;  %p1404_p3 = scmp.lt.s32.totalorder %s1627_s29, %s1627_s29 }
  0x38   : > { %p1405_p5 = scmp.lt.s32.totalorder %s1403_s9, %s1396_s26 }
  0x39   : > { %p1399_p13 = pnand %p1397_p8, %p1357_p12 }
  0x3a   : > { %p1406_p7 = por %p1405_p5, %p1404_p3 }
  0x3b   : > { %p1400_p0 = pneg %p1399_p13 }
  0x3d   : > { %p1407_p9 = pnand %p1406_p7, %p1400_p0 }
  0x3f   : > { %1410 = shalt.err (!%p1407_p9)
}
  0x40   : > { %1224 = dma.hbm_to_vmem [thread:$0]  (!%p1623_p10), %s1933_s2, 16, %s1627_s29, [#allocation7]  }
  0x41   : > { %s32_s18 = sadd.s32 1, %s1523_s16  ;;  %s41_s19 = sadd.s32 1, %s1515_s14 }
  0x42   : > { %p34_p12 = scmp.ge.s32.totalorder %s32_s18, 8  ;;  %p48_p11 = scmp.ne.s32.totalorder %s1515_s14, %s1511_s13 }
  0x43   : > { %p49_p1 = scmp.eq.s32.totalorder %s1527_s17, 0  ;;  %p1235_p2 = scmp.lt.s32.totalorder %s1527_s17, 8 }
  0x44   : > { %s1958_s18 = smov (%p34_p12, %s32_s18), 0  ;;  %p1945_p6 = scmp.ne.s32.totalorder %s1940_s21, 0 }
  0x45   : > { %p50_p4 = por %p49_p1, %p48_p11  ;;  %s36_s25 = ssub.s32 %s1523_s16, %s1958_s18 }
  0x46   : > { %p1687_p8 = por %p1945_p6, %p48_p11  ;;  %s178_s28 = sand.u32 1, %s1515_s14  }
  0x47   : > { %p39_p13 = scmp.eq.s32.totalorder %s36_s25, 0  ;;  %s1110_s29 = sshll.u32 %s178_s28, 8 }
  0x48   : > { %s1184_s30 = sshll.u32 %s1523_s16, 12  ;;  %s182_s21 = scalar_lea.vmem [#allocation3], %s1110_s29 }
  0x49   : > { %s1696_s4 = scalar_select %p39_p13, %s1515_s14, %s41_s19  }
  0x4a   : > { %s1701_s7 = scalar_lea.hbm %s1931_s0, %s1184_s30  ;;  %s192_s8 = sshll.u32 %s182_s21, 4  ;;  %s1709_s8 = int_to_ptr.vmem [resolvable:$true] %s192_s8 }
  0x4b   : > { %p1705_p10 = pnand %p1235_p2, %p50_p4  ;;  %s1711_s9 = scalar_lea.sflag [#allocation4], %s178_s28 }
  0x4c   : > { %s1411_s10 = scalar_lea.hbm %s1701_s7, 4096  ;;  %s1416_s25 = scalar_lea.hbm %s1931_s0, 32768 }
  0x4d   : > { %p1412_p0 = scmp.ne.s32.totalorder %s1701_s7, %s1411_s10  ;;  %p1413_p3 = pneg %p1705_p10 }
  0x4e   : > { %p1417_p9 = scmp.lt.u32.totalorder %s1701_s7, %s1931_s0  ;;  %p1418_p12 = scmp.lt.u32.totalorder %s1416_s25, %s1411_s10 }
  0x4f   : > { %p1414_p5 = pnand %p1413_p3, %p1412_p0  ;;  %p1420_p1 = scmp.lt.u32.totalorder %s1411_s10, %s1701_s7 }
  0x50   : > { %p1419_p11 = por %p1418_p12, %p1417_p9 }
  0x51   : > { %p1415_p7 = pneg %p1414_p5 }
  0x52   : > { %p1421_p2 = por %p1420_p1, %p1419_p11 }
  0x54   : > { %p1422_p4 = pnand %p1421_p2, %p1415_p7 }
  0x56   : > { %1425 = shalt.err (!%p1422_p4)
}
  0x57   : > { %s1426_s28 = scalar_lea.vmem %s1709_s8, 4096  ;;  %s1533_s5 = smov [#allocation3]  }
  0x58   : > { %p1427_p6 = scmp.ne.s32.totalorder %s1709_s8, %s1426_s28  ;;  %s1431_s6 = sshll.u32 %s1533_s5, 4  ;;  %s1432_s6 = int_to_ptr.vmem [resolvable:$false] %s1431_s6 }
  0x59   : > { %s1433_s21 = scalar_lea.vmem %s1432_s6, 8192  ;;  %p1434_p5 = scmp.lt.s32.totalorder %s1709_s8, %s1432_s6 }
  0x5a   : > { %p1429_p13 = pnand %p1427_p6, %p1413_p3  ;;  %p1435_p9 = scmp.lt.s32.totalorder %s1433_s21, %s1426_s28 }
  0x5c   : > { %p1430_p0 = pneg %p1429_p13  ;;  %p1436_p12 = por %p1435_p9, %p1434_p5 }
  0x5e   : > { %p1437_p11 = pnand %p1436_p12, %p1430_p0 }
  0x60   : > { %1440 = shalt.err (!%p1437_p11)
}
  0x61   : > { %s1534_s10 = smov 128   ;;  %s1535_s11 = smov 8  }
  0x62   : > { %1228 = dma.hbm_to_vmem [thread:$0]  (!%p1705_p10), %s1701_s7, 4096, %s1709_s8, %s1711_s9, %s1534_s10, %s1534_s10, %s1535_s11  }
  0x63   : > { %p1948_p3 = scmp.ne.s32.totalorder %s1943_s24, 0 }
  0x64   : > { %s1742_s19 = sand.u32 (!%p1948_p3), 1, %s1511_s13   ;;  %p1949_p7 = scmp.ne.s32.totalorder (!%p1948_p3), %s1941_s22, 0 }
  0x65   : > { %204 = sbr.rel (%p1948_p3) target bundleno = 442 (0x1ba), region = 32  ;;  %s1115_s25 = sshll.u32 (!%p1948_p3), %s1742_s19, 8 }
  0x66   : > { %s207_s29 = scalar_lea.sflag (!%p1948_p3), [#allocation4], %s1742_s19  ;;  %s1748_s30 = scalar_lea.vmem (!%p1948_p3), [#allocation3], %s1115_s25 }
  0x6c   : > { %1494 = dma.done.wait (%p1949_p7), %s207_s29, 4096  }
  0x6d   : > { %1496 = vsyncadd (%p1949_p7), %s207_s29, 4294963200  ;;  %p1950_p10 = scmp.ne.s32.totalorder %s1939_s20, 0 }
  0x6f   : > { %1498 = dma.done.wait (%p1950_p10), [#allocation7], 1232  }
  0x70   : > { %1500 = vsyncadd (%p1950_p10), [#allocation7], 4294966064  ;;  %v1536_v0 = vmov 0   ;;  %v1297_v1 = vld [vmem:[#allocation6] sm:$0xff]   ;;  %v1298_v2 = vld [vmem:[#allocation6 + $0x8] sm:$0xff]   ;;  %vm566_vm0 = vcmask 154624  }
  0x71   : > { %622 = vmatprep.subr.bf16.mxu0 %v1536_v0  ;;  %1186 = vmatprep.subr.bf16.mxu1 %v1536_v0  ;;  %v1299_v3 = vld [vmem:[#allocation6 + $0x10] sm:$0xff]   ;;  %v1300_v4 = vld [vmem:[#allocation6 + $0x18] sm:$0xff]   ;;  %v1309_v5 = vld [vmem:[%s1748_s30 + $0x4] ss:$8 sps:$4 sm:$0xff]   ;;  %vm615_vm1 = vcmask 1040384   ;;  %vm616_vm2 = vcmask 1041408  }
  0x72   : > { %623 = vmatpush1.bf16.msra.mxu0 %v1297_v1  ;;  %1196 = vmatpush1.bf16.msra.mxu1 %v1297_v1  ;;  %v1312_v6 = vld [vmem:[%s1748_s30 + $0x84] ss:$8 sps:$4 sm:$0xff]   ;;  %v1303_v9 = vld [vmem:[#allocation6 + $0x30] sm:$0xff]   ;;  %v1304_v10 = vld [vmem:[#allocation6 + $0x38] sm:$0xff]   ;;  %v1537_v11 = vmov 65535   ;;  %s1814_s20 = scalar_lea.vmem [#allocation9], %s1115_s25 }
  0x73   : > { %624 = vmatprep.subr.bf16.mxu0 %v1536_v0  ;;  %1187 = vmatprep.subr.bf16.mxu1 %v1536_v0  ;;  %v1301_v7 = vld [vmem:[#allocation6 + $0x20] sm:$0xff]   ;;  %v1302_v8 = vld [vmem:[#allocation6 + $0x28] sm:$0xff]   ;;  %v617_v12 = vsel %vm615_vm1, 4294967295, %v1537_v11  ;;  %v1313_v19 = vld [vmem:[%s1748_s30 + $0x14] ss:$8 sps:$4 sm:$0xff]   ;;  %s1185_s22 = sshll.u32 %s1519_s15, 12 }
  0x74   : > { %1161 = vmatprep.mubr.msk.bf16.mxu0 %vm566_vm0, %v1309_v5  ;;  %1169 = vmatprep.mubr.msk.bf16.mxu1 %vm566_vm0, %v1312_v6  ;;  %v1305_v13 = vld [vmem:[#allocation6 + $0x40] sm:$0xff]   ;;  %v1306_v14 = vld [vmem:[#allocation6 + $0x48] ss:$0 sps:$4 sm:$0x33]   ;;  %v618_v15 = vsel %vm616_vm2, %v617_v12, 0  ;;  %s999_s24 = sshll.u32 %s1814_s20, 4  ;;  %s1877_s26 = scalar_lea.hbm %s1934_s3, %s1185_s22  ;;  %s1879_s24 = int_to_ptr.vmem [resolvable:$true] %s999_s24 }
  0x75   : > { %v620_v16 = vand.u32 %v1306_v14, %v618_v15  ;;  %v1307_v17 = vld [vmem:[%s1748_s30] ss:$8 sps:$4 sm:$0xff]   ;;  %v1315_v20 = vld [vmem:[%s1748_s30 + $0x94] ss:$8 sps:$4 sm:$0xff]   ;;  %v1317_v21 = vld [vmem:[%s1748_s30 + $0x10] ss:$8 sps:$4 sm:$0xff]  }
  0x76   : > { %625 = vmatpush1.bf16.msra.mxu0 %v1298_v2  ;;  %1197 = vmatpush1.bf16.msra.mxu1 %v1298_v2  ;;  %v1310_v18 = vld [vmem:[%s1748_s30 + $0x80] ss:$8 sps:$4 sm:$0xff]   ;;  %v1318_v22 = vld [vmem:[%s1748_s30 + $0x90] ss:$8 sps:$4 sm:$0xff]   ;;  %v1319_v23 = vld [vmem:[%s1748_s30 + $0x24] ss:$8 sps:$4 sm:$0xff]  }
  0x77   : > { %626 = vmatprep.subr.bf16.mxu0 %v1536_v0  ;;  %1188 = vmatprep.subr.bf16.mxu1 %v1536_v0  ;;  %v1321_v24 = vld [vmem:[%s1748_s30 + $0xa4] ss:$8 sps:$4 sm:$0xff]   ;;  %v1323_v25 = vld [vmem:[%s1748_s30 + $0x20] ss:$8 sps:$4 sm:$0xff]   ;;  %v1325_v27 = vld [vmem:[%s1748_s30 + $0x34] ss:$8 sps:$4 sm:$0xff]  }
  0x78   : > { %v1324_v26 = vld [vmem:[%s1748_s30 + $0xa0] ss:$8 sps:$4 sm:$0xff]   ;;  %v1327_v28 = vld [vmem:[%s1748_s30 + $0xb4] ss:$8 sps:$4 sm:$0xff]   ;;  %v1329_v29 = vld [vmem:[%s1748_s30 + $0x30] ss:$8 sps:$4 sm:$0xff]  }
  0x79   : > { %v1330_v30 = vld [vmem:[%s1748_s30 + $0xb0] ss:$8 sps:$4 sm:$0xff]   ;;  %v1331_v31 = vld [vmem:[%s1748_s30 + $0x44] ss:$8 sps:$4 sm:$0xff]   ;;  %v1335_v33 = vld [vmem:[%s1748_s30 + $0x40] ss:$8 sps:$4 sm:$0xff]  }
  0x7a   : > { %627 = vmatpush1.bf16.msra.mxu0 %v1299_v3  ;;  %1198 = vmatpush1.bf16.msra.mxu1 %v1299_v3  ;;  %v1333_v32 = vld [vmem:[%s1748_s30 + $0xc4] ss:$8 sps:$4 sm:$0xff]   ;;  %v1336_v34 = vld [vmem:[%s1748_s30 + $0xc0] ss:$8 sps:$4 sm:$0xff]   ;;  %v1337_v35 = vld [vmem:[%s1748_s30 + $0x54] ss:$8 sps:$4 sm:$0xff]  }
  0x7b   : > { %628 = vmatprep.subr.bf16.mxu0 %v1536_v0  ;;  %1189 = vmatprep.subr.bf16.mxu1 %v1536_v0  ;;  %v1339_v36 = vld [vmem:[%s1748_s30 + $0xd4] ss:$8 sps:$4 sm:$0xff]   ;;  %v1341_v37 = vld [vmem:[%s1748_s30 + $0x50] ss:$8 sps:$4 sm:$0xff]   ;;  %v1343_v39 = vld [vmem:[%s1748_s30 + $0x64] ss:$8 sps:$4 sm:$0xff]  }
  0x7c   : > { %v1342_v38 = vld [vmem:[%s1748_s30 + $0xd0] ss:$8 sps:$4 sm:$0xff]   ;;  %v1345_v40 = vld [vmem:[%s1748_s30 + $0xe4] ss:$8 sps:$4 sm:$0xff]   ;;  %v1347_v41 = vld [vmem:[%s1748_s30 + $0x60] ss:$8 sps:$4 sm:$0xff]  }
  0x7d   : > { %v1348_v42 = vld [vmem:[%s1748_s30 + $0xe0] ss:$8 sps:$4 sm:$0xff]   ;;  %v1349_v43 = vld [vmem:[%s1748_s30 + $0x74] ss:$8 sps:$4 sm:$0xff]   ;;  %v1353_v45 = vld [vmem:[%s1748_s30 + $0x70] ss:$8 sps:$4 sm:$0xff]  }
  0x7e   : > { %629 = vmatpush1.bf16.msra.mxu0 %v1300_v4  ;;  %1199 = vmatpush1.bf16.msra.mxu1 %v1300_v4  ;;  %v1351_v44 = vld [vmem:[%s1748_s30 + $0xf4] ss:$8 sps:$4 sm:$0xff]   ;;  %v1354_v46 = vld [vmem:[%s1748_s30 + $0xf0] ss:$8 sps:$4 sm:$0xff]   ;;  %v1806_v47 = vld [vmem:[#allocation8] ss:$0 sm:$0xff] }
  0x7f   : > { %630 = vmatprep.subr.bf16.mxu0 %v1536_v0  ;;  %1190 = vmatprep.subr.bf16.mxu1 %v1536_v0  ;;  %s986_s15 = scalar_lea.sflag [#allocation5], %s1742_s19  ;;  %s1441_s9 = scalar_lea.vmem %s1879_s24, 4096 }
  0x80   : > { %p1442_p1 = scmp.ne.s32.totalorder %s1879_s24, %s1441_s9  ;;  %s1538_s28 = smov [#allocation9]  }
  0x81   : > { %s1445_s5 = sshll.u32 %s1538_s28, 4  ;;  %s1446_s5 = int_to_ptr.vmem [resolvable:$false] %s1445_s5 }
  0x82   : > { %631 = vmatpush1.bf16.msra.mxu0 %v1301_v7  ;;  %1200 = vmatpush1.bf16.msra.mxu1 %v1301_v7  ;;  %p1443_p2 = pnand %p1442_p1, %p1687_p8  ;;  %s1447_s6 = scalar_lea.vmem %s1446_s5, 8192 }
  0x83   : > { %632 = vmatprep.subr.bf16.mxu0 %v1536_v0  ;;  %1191 = vmatprep.subr.bf16.mxu1 %v1536_v0  ;;  %p1448_p6 = scmp.lt.s32.totalorder %s1879_s24, %s1446_s5  ;;  %p1449_p13 = scmp.lt.s32.totalorder %s1447_s6, %s1441_s9 }
  0x84   : > { %p1444_p4 = pneg %p1443_p2 }
  0x85   : > { %p1450_p0 = por %p1449_p13, %p1448_p6 }
  0x86   : > { %633 = vmatpush1.bf16.msra.mxu0 %v1302_v8  ;;  %1201 = vmatpush1.bf16.msra.mxu1 %v1302_v8 }
  0x87   : > { %634 = vmatprep.subr.bf16.mxu0 %v1536_v0  ;;  %1192 = vmatprep.subr.bf16.mxu1 %v1536_v0  ;;  %p1451_p5 = pnand %p1450_p0, %p1444_p4 }
  0x8a   : > { %635 = vmatpush1.bf16.msra.mxu0 %v1303_v9  ;;  %1202 = vmatpush1.bf16.msra.mxu1 %v1303_v9 }
  0x8b   : > { %636 = vmatprep.subr.bf16.mxu0 %v1536_v0  ;;  %1193 = vmatprep.subr.bf16.mxu1 %v1536_v0 }
  0x8e   : > { %637 = vmatpush1.bf16.msra.mxu0 %v1304_v10  ;;  %1203 = vmatpush1.bf16.msra.mxu1 %v1304_v10 }
  0x8f   : > { %638 = vmatprep.subr.bf16.mxu0 %v1536_v0  ;;  %1194 = vmatprep.subr.bf16.mxu1 %v1536_v0 }
  0x92   : > { %639 = vmatpush1.bf16.msra.mxu0 %v1305_v13  ;;  %1204 = vmatpush1.bf16.msra.mxu1 %v1305_v13 }
  0x93   : > { %640 = vmatprep.subr.bf16.mxu0 %v1536_v0  ;;  %1195 = vmatprep.subr.bf16.mxu1 %v1536_v0 }
  0x96   : > { %641 = vmatpush1.bf16.msra.mxu0 %v620_v16  ;;  %1205 = vmatpush1.bf16.msra.mxu1 %v620_v16 }
  0x99   : > { %655 = vmatmul.mubr.bf16.vlgmr.msra.gmra.mrb[0].mxu0 %v1307_v17  ;;  %719 = vmatmul.mubr.bf16.vlgmr.msra.gmra.mrb[0].mxu1 %v1310_v18 }
  0x9a   : > { %1162 = vmatprep.mubr.msk.bf16.mxu0 %vm566_vm0, %v1313_v19  ;;  %1170 = vmatprep.mubr.msk.bf16.mxu1 %vm566_vm0, %v1315_v20 }
  0xa1   : > { %663 = vmatmul.mubr.bf16.gmra.mrb[4].mxu0 %v1317_v21  ;;  %727 = vmatmul.mubr.bf16.gmra.mrb[4].mxu1 %v1318_v22 }
  0xa2   : > { %1163 = vmatprep.mubr.msk.bf16.mxu0 %vm566_vm0, %v1319_v23  ;;  %1171 = vmatprep.mubr.msk.bf16.mxu1 %vm566_vm0, %v1321_v24 }
  0xa9   : > { %671 = vmatmul.mubr.bf16.gmra.mrb[8].mxu0 %v1323_v25  ;;  %735 = vmatmul.mubr.bf16.gmra.mrb[8].mxu1 %v1324_v26 }
  0xaa   : > { %1164 = vmatprep.mubr.msk.bf16.mxu0 %vm566_vm0, %v1325_v27  ;;  %1172 = vmatprep.mubr.msk.bf16.mxu1 %vm566_vm0, %v1327_v28 }
  0xb1   : > { %679 = vmatmul.mubr.bf16.gmra.mrb[12].mxu0 %v1329_v29  ;;  %743 = vmatmul.mubr.bf16.gmra.mrb[12].mxu1 %v1330_v30 }
  0xb2   : > { %1165 = vmatprep.mubr.msk.bf16.mxu0 %vm566_vm0, %v1331_v31  ;;  %1173 = vmatprep.mubr.msk.bf16.mxu1 %vm566_vm0, %v1333_v32 }
  0xb9   : > { %687 = vmatmul.mubr.bf16.gmra.mrb[16].mxu0 %v1335_v33  ;;  %751 = vmatmul.mubr.bf16.gmra.mrb[16].mxu1 %v1336_v34 }
  0xba   : > { %1166 = vmatprep.mubr.msk.bf16.mxu0 %vm566_vm0, %v1337_v35  ;;  %1174 = vmatprep.mubr.msk.bf16.mxu1 %vm566_vm0, %v1339_v36 }
  0xc1   : > { %695 = vmatmul.mubr.bf16.gmra.mrb[20].mxu0 %v1341_v37  ;;  %759 = vmatmul.mubr.bf16.gmra.mrb[20].mxu1 %v1342_v38 }
  0xc2   : > { %1167 = vmatprep.mubr.msk.bf16.mxu0 %vm566_vm0, %v1343_v39  ;;  %1175 = vmatprep.mubr.msk.bf16.mxu1 %vm566_vm0, %v1345_v40 }
  0xc9   : > { %703 = vmatmul.mubr.bf16.gmra.mrb[24].mxu0 %v1347_v41  ;;  %767 = vmatmul.mubr.bf16.gmra.mrb[24].mxu1 %v1348_v42 }
  0xca   : > { %1168 = vmatprep.mubr.msk.bf16.mxu0 %vm566_vm0, %v1349_v43  ;;  %1176 = vmatprep.mubr.msk.bf16.mxu1 %vm566_vm0, %v1351_v44 }
  0xd1   : > { %711 = vmatmul.mubr.bf16.gmra.mrb[28].mxu0 %v1353_v45  ;;  %775 = vmatmul.mubr.bf16.gmra.mrb[28].mxu1 %v1354_v46 }
 0x16c   : > { %v656_v48 = vpop.f32.mrb[0].mxu0  ;;  %v720_v49 = vpop.f32.mrb[0].mxu1 }
 0x16d   : > { %v889_v50 = vadd.f32 %v1806_v47, %v656_v48  ;;  %v905_v51 = vadd.f32 %v1806_v47, %v720_v49  ;;  %v658_v52 = vpop.f32.mrb[1].mxu0  ;;  %v722_v53 = vpop.f32.mrb[1].mxu1 }
 0x16e   : > { %v659_v54 = vpop.f32.mrb[2].mxu0  ;;  %v723_v55 = vpop.f32.mrb[2].mxu1 }
 0x16f   : > { %v921_v56 = vmax.f32 %v889_v50, 0.0  ;;  %v937_v57 = vmax.f32 %v905_v51, 0.0  ;;  %v890_v58 = vadd.f32 %v1806_v47, %v659_v54  ;;  %v906_v59 = vadd.f32 %v1806_v47, %v723_v55  ;;  %v661_v60 = vpop.f32.mrb[3].mxu0  ;;  %v725_v61 = vpop.f32.mrb[3].mxu1 }
 0x171   : > { %953 = vst [vmem:[%s1814_s20] sm:$0xff] %v921_v56  ;;  %969 = vst [vmem:[%s1814_s20 + $0x80] sm:$0xff] %v937_v57  ;;  %v922_v62 = vmax.f32 %v890_v58, 0.0  ;;  %v938_v63 = vmax.f32 %v906_v59, 0.0 }
 0x173   : > { %954 = vst [vmem:[%s1814_s20 + $0x8] sm:$0xff] %v922_v62  ;;  %970 = vst [vmem:[%s1814_s20 + $0x88] sm:$0xff] %v938_v63 }
 0x174   : > { %v664_v0 = vpop.f32.mrb[4].mxu0  ;;  %v728_v1 = vpop.f32.mrb[4].mxu1 }
 0x175   : > { %v891_v2 = vadd.f32 %v1806_v47, %v664_v0  ;;  %v907_v3 = vadd.f32 %v1806_v47, %v728_v1  ;;  %v666_v4 = vpop.f32.mrb[5].mxu0  ;;  %v730_v5 = vpop.f32.mrb[5].mxu1 }
 0x176   : > { %v667_v6 = vpop.f32.mrb[6].mxu0  ;;  %v731_v7 = vpop.f32.mrb[6].mxu1 }
 0x177   : > { %v923_v8 = vmax.f32 %v891_v2, 0.0  ;;  %v939_v9 = vmax.f32 %v907_v3, 0.0  ;;  %v892_v10 = vadd.f32 %v1806_v47, %v667_v6  ;;  %v908_v11 = vadd.f32 %v1806_v47, %v731_v7  ;;  %v669_v12 = vpop.f32.mrb[7].mxu0  ;;  %v733_v13 = vpop.f32.mrb[7].mxu1 }
 0x179   : > { %955 = vst [vmem:[%s1814_s20 + $0x10] sm:$0xff] %v923_v8  ;;  %971 = vst [vmem:[%s1814_s20 + $0x90] sm:$0xff] %v939_v9  ;;  %v924_v14 = vmax.f32 %v892_v10, 0.0  ;;  %v940_v15 = vmax.f32 %v908_v11, 0.0 }
 0x17b   : > { %956 = vst [vmem:[%s1814_s20 + $0x18] sm:$0xff] %v924_v14  ;;  %972 = vst [vmem:[%s1814_s20 + $0x98] sm:$0xff] %v940_v15 }
 0x17c   : > { %v672_v16 = vpop.f32.mrb[8].mxu0  ;;  %v736_v17 = vpop.f32.mrb[8].mxu1 }
 0x17d   : > { %v893_v18 = vadd.f32 %v1806_v47, %v672_v16  ;;  %v909_v19 = vadd.f32 %v1806_v47, %v736_v17  ;;  %v674_v20 = vpop.f32.mrb[9].mxu0  ;;  %v738_v21 = vpop.f32.mrb[9].mxu1 }
 0x17e   : > { %v675_v22 = vpop.f32.mrb[10].mxu0  ;;  %v739_v23 = vpop.f32.mrb[10].mxu1 }
 0x17f   : > { %v925_v24 = vmax.f32 %v893_v18, 0.0  ;;  %v941_v25 = vmax.f32 %v909_v19, 0.0  ;;  %v894_v26 = vadd.f32 %v1806_v47, %v675_v22  ;;  %v910_v27 = vadd.f32 %v1806_v47, %v739_v23  ;;  %v677_v28 = vpop.f32.mrb[11].mxu0  ;;  %v741_v29 = vpop.f32.mrb[11].mxu1 }
 0x181   : > { %957 = vst [vmem:[%s1814_s20 + $0x20] sm:$0xff] %v925_v24  ;;  %973 = vst [vmem:[%s1814_s20 + $0xa0] sm:$0xff] %v941_v25  ;;  %v926_v30 = vmax.f32 %v894_v26, 0.0  ;;  %v942_v31 = vmax.f32 %v910_v27, 0.0 }
 0x183   : > { %958 = vst [vmem:[%s1814_s20 + $0x28] sm:$0xff] %v926_v30  ;;  %974 = vst [vmem:[%s1814_s20 + $0xa8] sm:$0xff] %v942_v31 }
 0x184   : > { %v680_v32 = vpop.f32.mrb[12].mxu0  ;;  %v744_v33 = vpop.f32.mrb[12].mxu1 }
 0x185   : > { %v895_v34 = vadd.f32 %v1806_v47, %v680_v32  ;;  %v911_v35 = vadd.f32 %v1806_v47, %v744_v33  ;;  %v682_v36 = vpop.f32.mrb[13].mxu0  ;;  %v746_v37 = vpop.f32.mrb[13].mxu1 }
 0x186   : > { %v683_v38 = vpop.f32.mrb[14].mxu0  ;;  %v747_v39 = vpop.f32.mrb[14].mxu1 }
 0x187   : > { %v927_v40 = vmax.f32 %v895_v34, 0.0  ;;  %v943_v41 = vmax.f32 %v911_v35, 0.0  ;;  %v896_v42 = vadd.f32 %v1806_v47, %v683_v38  ;;  %v912_v43 = vadd.f32 %v1806_v47, %v747_v39  ;;  %v685_v44 = vpop.f32.mrb[15].mxu0  ;;  %v749_v45 = vpop.f32.mrb[15].mxu1 }
 0x189   : > { %959 = vst [vmem:[%s1814_s20 + $0x30] sm:$0xff] %v927_v40  ;;  %975 = vst [vmem:[%s1814_s20 + $0xb0] sm:$0xff] %v943_v41  ;;  %v928_v46 = vmax.f32 %v896_v42, 0.0  ;;  %v944_v48 = vmax.f32 %v912_v43, 0.0 }
 0x18b   : > { %960 = vst [vmem:[%s1814_s20 + $0x38] sm:$0xff] %v928_v46  ;;  %976 = vst [vmem:[%s1814_s20 + $0xb8] sm:$0xff] %v944_v48 }
 0x18c   : > { %v688_v49 = vpop.f32.mrb[16].mxu0  ;;  %v752_v50 = vpop.f32.mrb[16].mxu1 }
 0x18d   : > { %v897_v51 = vadd.f32 %v1806_v47, %v688_v49  ;;  %v913_v52 = vadd.f32 %v1806_v47, %v752_v50  ;;  %v690_v53 = vpop.f32.mrb[17].mxu0  ;;  %v754_v54 = vpop.f32.mrb[17].mxu1 }
 0x18e   : > { %v691_v55 = vpop.f32.mrb[18].mxu0  ;;  %v755_v56 = vpop.f32.mrb[18].mxu1 }
 0x18f   : > { %v929_v57 = vmax.f32 %v897_v51, 0.0  ;;  %v945_v58 = vmax.f32 %v913_v52, 0.0  ;;  %v898_v59 = vadd.f32 %v1806_v47, %v691_v55  ;;  %v914_v60 = vadd.f32 %v1806_v47, %v755_v56  ;;  %v693_v61 = vpop.f32.mrb[19].mxu0  ;;  %v757_v62 = vpop.f32.mrb[19].mxu1 }
 0x191   : > { %961 = vst [vmem:[%s1814_s20 + $0x40] sm:$0xff] %v929_v57  ;;  %977 = vst [vmem:[%s1814_s20 + $0xc0] sm:$0xff] %v945_v58  ;;  %v930_v63 = vmax.f32 %v898_v59, 0.0  ;;  %v946_v0 = vmax.f32 %v914_v60, 0.0 }
 0x193   : > { %962 = vst [vmem:[%s1814_s20 + $0x48] sm:$0xff] %v930_v63  ;;  %978 = vst [vmem:[%s1814_s20 + $0xc8] sm:$0xff] %v946_v0 }
 0x194   : > { %v696_v1 = vpop.f32.mrb[20].mxu0  ;;  %v760_v2 = vpop.f32.mrb[20].mxu1 }
 0x195   : > { %v899_v3 = vadd.f32 %v1806_v47, %v696_v1  ;;  %v915_v4 = vadd.f32 %v1806_v47, %v760_v2  ;;  %v698_v5 = vpop.f32.mrb[21].mxu0  ;;  %v762_v6 = vpop.f32.mrb[21].mxu1 }
 0x196   : > { %v699_v7 = vpop.f32.mrb[22].mxu0  ;;  %v763_v8 = vpop.f32.mrb[22].mxu1 }
 0x197   : > { %v931_v9 = vmax.f32 %v899_v3, 0.0  ;;  %v947_v10 = vmax.f32 %v915_v4, 0.0  ;;  %v900_v11 = vadd.f32 %v1806_v47, %v699_v7  ;;  %v916_v12 = vadd.f32 %v1806_v47, %v763_v8  ;;  %v701_v13 = vpop.f32.mrb[23].mxu0  ;;  %v765_v14 = vpop.f32.mrb[23].mxu1 }
 0x199   : > { %963 = vst [vmem:[%s1814_s20 + $0x50] sm:$0xff] %v931_v9  ;;  %979 = vst [vmem:[%s1814_s20 + $0xd0] sm:$0xff] %v947_v10  ;;  %v932_v15 = vmax.f32 %v900_v11, 0.0  ;;  %v948_v16 = vmax.f32 %v916_v12, 0.0 }
 0x19b   : > { %964 = vst [vmem:[%s1814_s20 + $0x58] sm:$0xff] %v932_v15  ;;  %980 = vst [vmem:[%s1814_s20 + $0xd8] sm:$0xff] %v948_v16 }
 0x19c   : > { %v704_v17 = vpop.f32.mrb[24].mxu0  ;;  %v768_v18 = vpop.f32.mrb[24].mxu1 }
 0x19d   : > { %v901_v19 = vadd.f32 %v1806_v47, %v704_v17  ;;  %v917_v20 = vadd.f32 %v1806_v47, %v768_v18  ;;  %v706_v21 = vpop.f32.mrb[25].mxu0  ;;  %v770_v22 = vpop.f32.mrb[25].mxu1 }
 0x19e   : > { %v707_v23 = vpop.f32.mrb[26].mxu0  ;;  %v771_v24 = vpop.f32.mrb[26].mxu1 }
 0x19f   : > { %v933_v25 = vmax.f32 %v901_v19, 0.0  ;;  %v949_v26 = vmax.f32 %v917_v20, 0.0  ;;  %v902_v27 = vadd.f32 %v1806_v47, %v707_v23  ;;  %v918_v28 = vadd.f32 %v1806_v47, %v771_v24  ;;  %v709_v29 = vpop.f32.mrb[27].mxu0  ;;  %v773_v30 = vpop.f32.mrb[27].mxu1 }
 0x1a1   : > { %965 = vst [vmem:[%s1814_s20 + $0x60] sm:$0xff] %v933_v25  ;;  %981 = vst [vmem:[%s1814_s20 + $0xe0] sm:$0xff] %v949_v26  ;;  %v934_v31 = vmax.f32 %v902_v27, 0.0  ;;  %v950_v32 = vmax.f32 %v918_v28, 0.0 }
 0x1a3   : > { %966 = vst [vmem:[%s1814_s20 + $0x68] sm:$0xff] %v934_v31  ;;  %982 = vst [vmem:[%s1814_s20 + $0xe8] sm:$0xff] %v950_v32 }
 0x1a4   : > { %v712_v33 = vpop.f32.mrb[28].mxu0  ;;  %v776_v34 = vpop.f32.mrb[28].mxu1 }
 0x1a5   : > { %v903_v35 = vadd.f32 %v1806_v47, %v712_v33  ;;  %v919_v36 = vadd.f32 %v1806_v47, %v776_v34  ;;  %v714_v37 = vpop.f32.mrb[29].mxu0  ;;  %v778_v38 = vpop.f32.mrb[29].mxu1 }
 0x1a6   : > { %v715_v39 = vpop.f32.mrb[30].mxu0  ;;  %v779_v40 = vpop.f32.mrb[30].mxu1 }
 0x1a7   : > { %v935_v41 = vmax.f32 %v903_v35, 0.0  ;;  %v951_v42 = vmax.f32 %v919_v36, 0.0  ;;  %v904_v43 = vadd.f32 %v1806_v47, %v715_v39  ;;  %v920_v44 = vadd.f32 %v1806_v47, %v779_v40  ;;  %v717_v45 = vpop.f32.mrb[31].mxu0  ;;  %v781_v46 = vpop.f32.mrb[31].mxu1 }
 0x1a9   : > { %967 = vst [vmem:[%s1814_s20 + $0x70] sm:$0xff] %v935_v41  ;;  %983 = vst [vmem:[%s1814_s20 + $0xf0] sm:$0xff] %v951_v42  ;;  %v936_v48 = vmax.f32 %v904_v43, 0.0  ;;  %v952_v49 = vmax.f32 %v920_v44, 0.0 }
 0x1ab   : > { %968 = vst [vmem:[%s1814_s20 + $0x78] sm:$0xff] %v936_v48  ;;  %984 = vst [vmem:[%s1814_s20 + $0xf8] sm:$0xff] %v952_v49 }
 0x1ac   : > { %1454 = shalt.err (!%p1451_p5)
}
 0x1ad   : > { %s1455_s21 = scalar_lea.hbm %s1877_s26, 4096  ;;  %s1459_s25 = scalar_lea.hbm %s1934_s3, 32768 }
 0x1ae   : > { %p1456_p9 = scmp.ne.s32.totalorder %s1877_s26, %s1455_s21  ;;  %p1460_p3 = scmp.lt.u32.totalorder %s1877_s26, %s1934_s3 }
 0x1af   : > { %p1461_p7 = scmp.lt.u32.totalorder %s1459_s25, %s1455_s21  ;;  %p1463_p1 = scmp.lt.u32.totalorder %s1455_s21, %s1877_s26 }
 0x1b0   : > { %p1457_p12 = pnand %p1456_p9, %p1687_p8 }
 0x1b1   : > { %p1462_p10 = por %p1461_p7, %p1460_p3 }
 0x1b2   : > { %p1458_p11 = pneg %p1457_p12 }
 0x1b3   : > { %p1464_p2 = por %p1463_p1, %p1462_p10 }
 0x1b5   : > { %p1465_p4 = pnand %p1464_p2, %p1458_p11 }
 0x1b7   : > { %1468 = shalt.err (!%p1465_p4)
}
 0x1b8   : > { %s1539_s20 = smov 128   ;;  %s1540_s22 = smov 8  }
 0x1b9   : > { %1216 = dma.vmem_to_hbm [thread:$0]  (%p1687_p8), %s1879_s24, 4096, %s1877_s26, %s986_s15, %s1539_s20, %s1539_s20, %s1540_s22  }
 0x1ba PF: > { %p1238_p6 = scmp.ge.s32.totalorder %s1527_s17, 2  ;;  %s1014_s7 = sand.u32 1, %s1507_s12  }
 0x1bb   : > { %p1951_p13 = scmp.ne.s32.totalorder %s1942_s23, 0  ;;  %s1015_s8 = scalar_lea.sflag [#allocation5], %s1014_s7 }
 0x1bd   : > { %p1230_p0 = pnand %p1238_p6, %p1951_p13 }
 0x1bf   : > { %1502 = dma.done.wait (!%p1230_p0), %s1015_s8, 4096  }
 0x1c0   : > { %1504 = vsyncadd (!%p1230_p0), %s1015_s8, 4294963200  ;;  %s20_s17 = sadd.s32 1, %s1527_s17   ;;  %s1952_s12 = smov %s1511_s13 }
 0x1c1   : > { %p17_p5 = scmp.ge.s32.totalorder %s20_s17, 10   ;;  %s1953_s13 = smov %s1515_s14 }
 0x1c2   : > { %s1954_s14 = smov %s1696_s4  ;;  %s1955_s15 = smov %s1523_s16 }
 0x1c3   : > { %s1956_s16 = smov %s1958_s18  ;;  %19 = sbr.rel (!%p17_p5) target bundleno = 7 (0x7), region = 94 }
 0x1ca   :  { %1020 = vsyncpa [#allocation4], 1 }
 0x1cb   :  { %1022 = vsyncpa [#allocation4 + $0x1], 1 }
 0x1cc   :  { %1023 = vsyncpa [#allocation7], 1 }
 0x1cd   :  { %1024 = vsyncpa [#allocation5], 1 }
 0x1ce   :  { %1026 = vsyncpa [#allocation5 + $0x1], 1 }

</bundles_post_ra>
